<compile_context>
chip_gen: v7x
topology: tpu7x:2x2x1
jax: 0.10.0
libtpu: 0.0.40
codegen_flags: <defaults>
</compile_context>

<pallas_src>
import functools

import jax
import jax.numpy as jnp
from jax.experimental import pallas as pl
from jax.experimental.pallas import tpu as pltpu


def _focal_kernel(logit_ref, tgt_ref, out_ref, acc_ref, *,
                  hw, tile, total_pixels, gamma, alpha):
    """Per-block cross-entropy partial sums + final focal-loss scalar.

    logit_ref : (1, C, TILE)  float  VMEM tile of logits (pixels on lanes)
    tgt_ref   : (1, 1, TILE)  int32  VMEM tile of class indices
    out_ref   : (1, 1)        f32    scalar output
    acc_ref   : (1, TILE)     f32    per-lane running CE partial sums
    """
    i = pl.program_id(0)           # sample index
    j = pl.program_id(1)           # pixel-block index
    nj = pl.num_programs(1)
    step = i * nj + j              # linearized grid step

    @pl.when(step == 0)
    def _init():
        acc_ref[...] = jnp.zeros_like(acc_ref)

    x = logit_ref[0].astype(jnp.float32)          # (C, TILE)
    t = tgt_ref[0]                                # (1, TILE) int32

    # Numerically stable logsumexp over the class (sublane) axis.
    m = jnp.max(x, axis=0, keepdims=True)                             # (1, TILE)
    lse = m + jnp.log(jnp.sum(jnp.exp(x - m), axis=0, keepdims=True))  # (1, TILE)

    # Select the target-class logit via a one-hot compare (no gather).
    cls = jax.lax.broadcasted_iota(jnp.int32, x.shape, 0)              # (C, TILE)
    picked = jnp.sum(jnp.where(cls == t, x, 0.0), axis=0, keepdims=True)

    ce = lse - picked                                                  # (1, TILE)

    # Mask out padded pixels of the last block (global pixel id >= H*W).
    lane = jax.lax.broadcasted_iota(jnp.int32, ce.shape, 1)            # (1, TILE)
    valid = (j * tile + lane) < hw
    acc_ref[...] += jnp.where(valid, ce, 0.0)      # pure VPU elementwise add

    @pl.when(step == pl.num_programs(0) * nj - 1)
    def _finalize():
        # Single cross-lane reduce for the whole kernel.
        total = jnp.sum(acc_ref[...], axis=(0, 1), keepdims=True)      # (1, 1)
        mean_ce = total / jnp.float32(total_pixels)
        logpt = -mean_ce
        pt = jnp.exp(logpt)
        out_ref[...] = -((1.0 - pt) ** gamma) * (logpt * jnp.float32(alpha))


def focal_loss_pallas(logit, target, *, gamma=2.0, alpha=0.5, tile_pixels=2048):
    """logit: (N, C, H, W) float; target: (N, H, W) int class indices."""
    n, c, h, w = logit.shape
    hw = h * w
    total_pixels = n * hw

    def _round_up(a, b):
        return ((a + b - 1) // b) * b

    # Lane-dense pixel tile: multiple of 128, as large as useful.
    # VMEM per step (double-buffered inputs) is roughly
    #   2 * tile * (c + 1) * bytes_per_elem  — tiny for small C, so the
    # default scoped-VMEM limit is plenty on v5e/v6e/v7x.  For very large
    # class counts pass a smaller `tile_pixels`.
    tile = max(128, min(int(tile_pixels), _round_up(hw, 128)))
    pb = pl.cdiv(hw, tile)
    hw_pad = pb * tile

    # Free contiguous views of the NCHW input — no transpose, no HBM copy.
    x = logit.reshape(n, c, hw)
    t = target.reshape(n, 1, hw).astype(jnp.int32)
    if hw_pad != hw:
        x = jnp.pad(x, ((0, 0), (0, 0), (0, hw_pad - hw)))
        t = jnp.pad(t, ((0, 0), (0, 0), (0, hw_pad - hw)))

    kernel = functools.partial(
        _focal_kernel, hw=hw, tile=tile, total_pixels=total_pixels,
        gamma=float(gamma), alpha=float(alpha))

    out = pl.pallas_call(
        kernel,
        out_shape=jax.ShapeDtypeStruct((1, 1), jnp.float32),
        grid_spec=pltpu.PrefetchScalarGridSpec(
            num_scalar_prefetch=0,
            grid=(n, pb),
            in_specs=[
                # (1, C, TILE): C == full dim (sublanes), TILE lane-dense.
                pl.BlockSpec((1, c, tile), lambda i, j: (i, 0, j)),
                pl.BlockSpec((1, 1, tile), lambda i, j: (i, 0, j)),
            ],
            out_specs=pl.BlockSpec((1, 1), lambda i, j: (0, 0)),
            scratch_shapes=[pltpu.VMEM((1, tile), jnp.float32)],
        ),
        compiler_params=pltpu.CompilerParams(
            dimension_semantics=("arbitrary", "arbitrary")),
    )(x, t)
    return out[0, 0]


def focal_loss_ref(logit, target, gamma=2.0, alpha=0.5):
    """Pure-JAX reference matching the PyTorch module."""
    n, c, h, w = logit.shape
    x = jnp.transpose(logit, (0, 2, 3, 1)).reshape(-1, c).astype(jnp.float32)
    t = target.reshape(-1).astype(jnp.int32)
    logp = jax.nn.log_softmax(x, axis=-1)
    ce = -jnp.take_along_axis(logp, t[:, None], axis=-1)[:, 0]
    logpt = -jnp.mean(ce)
    pt = jnp.exp(logpt)
    logpt = logpt * alpha
    return -((1.0 - pt) ** gamma) * logpt


if __name__ == "__main__":
    key = jax.random.PRNGKey(0)
    k1, k2 = jax.random.split(key)

    N, C, H, W = 2, 4, 16, 16
    logit = jax.random.normal(k1, (N, C, H, W), dtype=jnp.float32)
    target = jax.random.randint(k2, (N, H, W), 0, C, dtype=jnp.int32)

    loss = focal_loss_pallas(logit, target, gamma=2.0, alpha=0.5)
    loss = jax.block_until_ready(loss)

    ref = focal_loss_ref(logit, target, gamma=2.0, alpha=0.5)
    assert jnp.allclose(loss, ref, rtol=1e-5, atol=1e-6), (loss, ref)

    print("KERNEL_OK")
</pallas_src>

<mosaic_0001>
module attributes {stable_mosaic.version = 11 : i64} {
  func.func @_focal_kernel(%arg0: i32, %arg1: i32, %arg2: memref<1x4x256xf32, #tpu.memory_space<vmem>>, %arg3: memref<1x1x256xi32, #tpu.memory_space<vmem>>, %arg4: memref<1x1xf32, #tpu.memory_space<vmem>>, %arg5: memref<1x256xf32, #tpu.memory_space<vmem>>) attributes {dimension_semantics = [#tpu.dimension_semantics<arbitrary>, #tpu.dimension_semantics<arbitrary>], iteration_bounds = array<i64: 2, 1>, scalar_prefetch = 0 : i64, scratch_operands = 1 : i64, tpu.core_type = #tpu.core_type<tc>, window_params = [{transform_indices = @transform_0, window_bounds = array<i64: 1, 4, 256>}, {transform_indices = @transform_1, window_bounds = array<i64: 1, 1, 256>}, {pipeline_mode = #tpu.pipeline_mode<synchronous>, transform_indices = @transform_2, window_bounds = array<i64: 1, 1>}]} {
    %c1_i32 = arith.constant 1 : i32
    %0 = arith.muli %arg0, %c1_i32 : i32
    %1 = arith.addi %0, %arg1 : i32
    %c0_i32 = arith.constant 0 : i32
    %2 = arith.cmpi eq, %1, %c0_i32 : i32
    %3 = arith.extui %2 : i1 to i32
    %c0_i32_0 = arith.constant 0 : i32
    %4 = arith.cmpi ne, %3, %c0_i32_0 : i32
    scf.if %4 {
      %cst_17 = arith.constant 0.000000e+00 : f32
      %40 = vector.broadcast %cst_17 : f32 to vector<1x256xf32>
      %c0_18 = arith.constant 0 : index
      %c0_19 = arith.constant 0 : index
      %41 = vector.load %arg5[%c0_18, %c0_19] : memref<1x256xf32, #tpu.memory_space<vmem>>, vector<1x256xf32>
      tpu.vector_store %arg5[%c0_18, %c0_19], %40 {strides = array<i32>} : memref<1x256xf32, #tpu.memory_space<vmem>>, vector<1x256xf32>,
    } else {
    }
    %c0 = arith.constant 0 : index
    %c0_1 = arith.constant 0 : index
    %c0_2 = arith.constant 0 : index
    %5 = vector.load %arg2[%c0, %c0_1, %c0_2] : memref<1x4x256xf32, #tpu.memory_space<vmem>>, vector<1x4x256xf32>
    %6 = vector.shape_cast %5 : vector<1x4x256xf32> to vector<4x256xf32>
    %c0_3 = arith.constant 0 : index
    %c0_4 = arith.constant 0 : index
    %c0_5 = arith.constant 0 : index
    %7 = vector.load %arg3[%c0_3, %c0_4, %c0_5] : memref<1x1x256xi32, #tpu.memory_space<vmem>>, vector<1x1x256xi32>
    %8 = vector.shape_cast %7 : vector<1x1x256xi32> to vector<1x256xi32>
    %cst = arith.constant dense<0xFF800000> : vector<256xf32>
    %9 = vector.multi_reduction <maximumf>, %6, %cst [0] : vector<4x256xf32> to vector<256xf32>
    %10 = vector.shape_cast %9 : vector<256xf32> to vector<1x256xf32>
    %11 = vector.broadcast %10 : vector<1x256xf32> to vector<4x256xf32>
    %12 = arith.subf %6, %11 : vector<4x256xf32>
    %13 = math.exp %12 : vector<4x256xf32>
    %cst_6 = arith.constant dense<0.000000e+00> : vector<256xf32>
    %14 = vector.multi_reduction <add>, %13, %cst_6 [0] : vector<4x256xf32> to vector<256xf32>
    %15 = vector.shape_cast %14 : vector<256xf32> to vector<1x256xf32>
    %16 = math.log %15 : vector<1x256xf32>
    %17 = arith.addf %10, %16 : vector<1x256xf32>
    %18 = tpu.iota {dimensions = array<i32: 0>} : vector<4x256xi32>
    %19 = vector.broadcast %8 : vector<1x256xi32> to vector<4x256xi32>
    %20 = arith.cmpi eq, %18, %19 : vector<4x256xi32>
    %cst_7 = arith.constant 0.000000e+00 : f32
    %21 = vector.broadcast %cst_7 : f32 to vector<4x256xf32>
    %22 = arith.select %20, %6, %21 : vector<4x256xi1>, vector<4x256xf32>
    %cst_8 = arith.constant dense<0.000000e+00> : vector<256xf32>
    %23 = vector.multi_reduction <add>, %22, %cst_8 [0] : vector<4x256xf32> to vector<256xf32>
    %24 = vector.shape_cast %23 : vector<256xf32> to vector<1x256xf32>
    %25 = arith.subf %17, %24 : vector<1x256xf32>
    %26 = tpu.iota {dimensions = array<i32: 1>} : vector<1x256xi32>
    %c256_i32 = arith.constant 256 : i32
    %27 = arith.muli %arg1, %c256_i32 : i32
    %28 = vector.broadcast %27 : i32 to vector<1x256xi32>
    %29 = arith.addi %28, %26 : vector<1x256xi32>
    %c256_i32_9 = arith.constant 256 : i32
    %30 = vector.broadcast %c256_i32_9 : i32 to vector<1x256xi32>
    %31 = arith.cmpi slt, %29, %30 : vector<1x256xi32>
    %c0_10 = arith.constant 0 : index
    %c0_11 = arith.constant 0 : index
    %32 = vector.load %arg5[%c0_10, %c0_11] : memref<1x256xf32, #tpu.memory_space<vmem>>, vector<1x256xf32>
    %cst_12 = arith.constant 0.000000e+00 : f32
    %33 = vector.broadcast %cst_12 : f32 to vector<1x256xf32>
    %34 = arith.select %31, %25, %33 : vector<1x256xi1>, vector<1x256xf32>
    %35 = arith.addf %32, %34 : vector<1x256xf32>
    %c0_13 = arith.constant 0 : index
    %c0_14 = arith.constant 0 : index
    %36 = vector.load %arg5[%c0_13, %c0_14] : memref<1x256xf32, #tpu.memory_space<vmem>>, vector<1x256xf32>
    tpu.vector_store %arg5[%c0_13, %c0_14], %35 {strides = array<i32>} : memref<1x256xf32, #tpu.memory_space<vmem>>, vector<1x256xf32>,
    %c1_i32_15 = arith.constant 1 : i32
    %37 = arith.cmpi eq, %1, %c1_i32_15 : i32
    %38 = arith.extui %37 : i1 to i32
    %c0_i32_16 = arith.constant 0 : i32
    %39 = arith.cmpi ne, %38, %c0_i32_16 : i32
    scf.if %39 {
      %c0_17 = arith.constant 0 : index
      %c0_18 = arith.constant 0 : index
      %40 = vector.load %arg5[%c0_17, %c0_18] : memref<1x256xf32, #tpu.memory_space<vmem>>, vector<1x256xf32>
      %41 = vector.shape_cast %40 : vector<1x256xf32> to vector<1x1x256xf32>
      %cst_19 = arith.constant dense<0.000000e+00> : vector<1xf32>
      %42 = vector.multi_reduction <add>, %41, %cst_19 [1, 2] : vector<1x1x256xf32> to vector<1xf32>
      %43 = vector.shape_cast %42 : vector<1xf32> to vector<1x1x1xf32>
      %44 = vector.extract %43[0, 0, 0] : f32 from vector<1x1x1xf32>
      %45 = vector.broadcast %44 : f32 to vector<1x1xf32>
      %cst_20 = arith.constant 5.120000e+02 : f32
      %46 = vector.broadcast %cst_20 : f32 to vector<1x1xf32>
      %47 = arith.divf %45, %46 : vector<1x1xf32>
      %cst_21 = arith.constant 0.000000e+00 : f32
      %48 = vector.broadcast %cst_21 : f32 to vector<1x1xf32>
      %49 = arith.subf %48, %47 : vector<1x1xf32>
      %50 = math.exp %49 : vector<1x1xf32>
      %cst_22 = arith.constant 1.000000e+00 : f32
      %51 = vector.broadcast %cst_22 : f32 to vector<1x1xf32>
      %52 = arith.subf %51, %50 : vector<1x1xf32>
      %cst_23 = arith.constant 2.000000e+00 : f32
      %53 = vector.broadcast %cst_23 : f32 to vector<1x1xf32>
      %54 = math.powf %52, %53 : vector<1x1xf32>
      %cst_24 = arith.constant 0.000000e+00 : f32
      %55 = vector.broadcast %cst_24 : f32 to vector<1x1xf32>
      %56 = arith.subf %55, %54 : vector<1x1xf32>
      %cst_25 = arith.constant 5.000000e-01 : f32
      %57 = vector.broadcast %cst_25 : f32 to vector<1x1xf32>
      %58 = arith.mulf %49, %57 : vector<1x1xf32>
      %59 = arith.mulf %56, %58 : vector<1x1xf32>
      %c0_26 = arith.constant 0 : index
      %c0_27 = arith.constant 0 : index
      %60 = vector.load %arg4[%c0_26, %c0_27] : memref<1x1xf32, #tpu.memory_space<vmem>>, vector<1x1xf32>
      tpu.vector_store %arg4[%c0_26, %c0_27], %59 {strides = array<i32>} : memref<1x1xf32, #tpu.memory_space<vmem>>, vector<1x1xf32>,
    } else {
    }
    return
  }
  func.func @transform_0(%arg0: i32, %arg1: i32) -> (i32, i32, i32) {
    %c0_i32 = arith.constant 0 : i32
    %c0_i32_0 = arith.constant 0 : i32
    return %arg0, %c0_i32, %arg1 : i32, i32, i32
  }
  func.func @transform_1(%arg0: i32, %arg1: i32) -> (i32, i32, i32) {
    %c0_i32 = arith.constant 0 : i32
    %c0_i32_0 = arith.constant 0 : i32
    return %arg0, %c0_i32, %arg1 : i32, i32, i32
  }
  func.func @transform_2(%arg0: i32, %arg1: i32) -> (i32, i32) {
    %c0_i32 = arith.constant 0 : i32
    %c0_i32_0 = arith.constant 0 : i32
    %c0_i32_1 = arith.constant 0 : i32
    return %c0_i32, %c0_i32_0 : i32, i32
  }
}

</mosaic_0001>

<bundles_post_ra>
// kernel: tpu_custom_call.1
= control target key start
LH: loop header
LB: loop body
LE: loop exit
PB: predicated region body
PF: predicated region fallthrough
CT: control target
= control target key end

     0   :  { %7 = vsyncpa [#allocation4], 0  ;;  %s957_s0 = inlined_call_operand.hbm [shape: f32[2,4,256], index: 0, kind: input, shape index: {}]   ;;  %s958_s1 = inlined_call_operand.hbm [shape: s32[2,1,256], index: 1, kind: input, shape index: {}]   ;;  %s959_s2 = inlined_call_operand.hbm [shape: f32[1,1], index: 2, kind: output, shape index: {}]  }
   0x1   :  { %9 = vsyncpa [#allocation4 + $0x1], 0 }
   0x2   :  { %10 = vsyncpa [#allocation7], 0 }
   0x3   :  { %12 = vsyncpa [#allocation7 + $0x1], 0 }
   0x4   :  { %13 = vsyncpa [#allocation5], 0  ;;  %s738_s9 = smov 0   ;;  %s740_s10 = smov 0  }
   0x5   :  { %s742_s11 = smov 0   ;;  %s744_s12 = smov 0  }
   0x6   :  { %s746_s13 = smov 0   ;;  %s748_s14 = smov 0  }
   0x7 LB: > { %s471_s15 = sadd.s32 4294967295, %s716_s14   ;;  %s31_s16 = sadd.s32 1, %s712_s13  ;;  %s716_s14 = sphi %s748_s14, %s19_s14   ;;  %s712_s13 = sphi %s746_s13, %s974_s13   ;;  %s708_s12 = sphi %s744_s12, %s973_s12   ;;  %s704_s11 = sphi %s742_s11, %s972_s11   ;;  %s700_s10 = sphi %s740_s10, %s971_s10   ;;  %s696_s9 = sphi %s738_s9, %s970_s9  }
   0x8   : > { %p33_p0 = scmp.ge.s32.totalorder %s31_s16, 2  ;;  %s40_s17 = sadd.s32 1, %s704_s11 }
   0x9   : > { %p47_p1 = scmp.ne.s32.totalorder %s704_s11, %s700_s10  ;;  %p48_p2 = scmp.eq.s32.totalorder %s716_s14, 0 }
   0xa   : > { %s976_s16 = smov (%p33_p0, %s31_s16), 0  ;;  %p53_p4 = scmp.ne.s32.totalorder %s700_s10, %s696_s9 }
   0xb   : > { %p774_p3 = por %p48_p2, %p47_p1  ;;  %s35_s19 = ssub.s32 %s712_s13, %s976_s16 }
   0xc   : > { %p54_p5 = scmp.eq.s32.totalorder %s471_s15, 0  ;;  %p38_p6 = scmp.eq.s32.totalorder %s35_s19, 0 }
   0xd   : > { %p509_p8 = scmp.lt.s32.totalorder %s716_s14, 2  ;;  %s792_s22 = sand.u32 1, %s704_s11  }
   0xe   : > { %p783_p7 = por %p54_p5, %p53_p4  ;;  %s489_s23 = sshll.u32 %s712_s13, 7 }
   0xf   : > { %s789_s21 = scalar_select %p38_p6, %s704_s11, %s40_s17  }
  0x10   : > { %s962_s20 = scalar_select %p783_p7, 1, 0 }
  0x11   : > { %s474_s24 = sshll.u32 %s792_s22, 3  ;;  %s799_s27 = scalar_lea.hbm %s957_s0, %s489_s23 }
  0x12   : > { %s130_s28 = scalar_lea.vmem [#allocation3], %s474_s24  ;;  %p803_p9 = pnand %p509_p8, %p774_p3 }
  0x13   : > { %s140_s29 = sshll.u32 %s130_s28, 4  ;;  %s127_s3 = scalar_lea.sflag [#allocation4], %s792_s22  ;;  %s807_s29 = int_to_ptr.vmem [resolvable:$true] %s140_s29 }
  0x14   : > { %s572_s4 = scalar_lea.hbm %s799_s27, 128  ;;  %p574_p13 = pneg %p803_p9 }
  0x15   : > { %p573_p12 = scmp.ne.s32.totalorder %s799_s27, %s572_s4  ;;  %s577_s7 = scalar_lea.hbm %s957_s0, 256 }
  0x16   : > { %p578_p2 = scmp.lt.u32.totalorder %s799_s27, %s957_s0  ;;  %p579_p3 = scmp.lt.u32.totalorder %s577_s7, %s572_s4 }
  0x17   : > { %p575_p0 = pnand %p574_p13, %p573_p12  ;;  %p581_p5 = scmp.lt.u32.totalorder %s572_s4, %s799_s27 }
  0x18   : > { %p580_p4 = por %p579_p3, %p578_p2 }
  0x19   : > { %p576_p1 = pneg %p575_p0 }
  0x1a   : > { %p582_p6 = por %p581_p5, %p580_p4 }
  0x1c   : > { %p583_p8 = pnand %p582_p6, %p576_p1 }
  0x1e   : > { %586 = shalt.err (!%p583_p8)
}
  0x1f   : > { %s587_s17 = scalar_lea.vmem %s807_s29, 128  ;;  %s718_s18 = smov [#allocation3]  }
  0x20   : > { %p588_p12 = scmp.ne.s32.totalorder %s807_s29, %s587_s17  ;;  %s592_s19 = sshll.u32 %s718_s18, 4  ;;  %s593_s19 = int_to_ptr.vmem [resolvable:$false] %s592_s19 }
  0x21   : > { %s594_s23 = scalar_lea.vmem %s593_s19, 256  ;;  %p595_p11 = scmp.lt.s32.totalorder %s807_s29, %s593_s19 }
  0x22   : > { %p590_p0 = pnand %p588_p12, %p574_p13  ;;  %p596_p2 = scmp.lt.s32.totalorder %s594_s23, %s587_s17 }
  0x24   : > { %p591_p10 = pneg %p590_p0  ;;  %p597_p3 = por %p596_p2, %p595_p11 }
  0x26   : > { %p598_p4 = pnand %p597_p3, %p591_p10 }
  0x28   : > { %601 = shalt.err (!%p598_p4)
}
  0x29   : > { %505 = dma.hbm_to_vmem [thread:$0]  (!%p803_p9), %s799_s27, 128, %s807_s29, %s127_s3  }
  0x2a   : > { %p964_p1 = scmp.lt.s32.totalorder %s716_s14, 3  ;;  %p965_p5 = scmp.ge.s32.totalorder %s716_s14, 1 }
  0x2b   : > { %s477_s25 = sshll.u32 %s792_s22, 1  ;;  %s490_s26 = sshll.u32 %s712_s13, 5 }
  0x2c   : > { %p841_p6 = pnand %p965_p5, %p964_p1  ;;  %s850_s5 = scalar_lea.hbm %s958_s1, %s490_s26 }
  0x2d   : > { %s151_s6 = scalar_lea.vmem [#allocation6], %s477_s25  ;;  %s148_s27 = scalar_lea.sflag [#allocation7], %s792_s22 }
  0x2e   : > { %s966_s24 = scalar_select %p841_p6, 1, 0 }
  0x2f   : > { %s161_s7 = sshll.u32 %s151_s6, 4  ;;  %s602_s29 = scalar_lea.hbm %s850_s5, 32  ;;  %s162_s7 = int_to_ptr.vmem [resolvable:$true] %s161_s7 }
  0x30   : > { %p603_p10 = scmp.ne.s32.totalorder %s850_s5, %s602_s29  ;;  %s607_s9 = scalar_lea.hbm %s958_s1, 64 }
  0x31   : > { %p608_p12 = scmp.lt.u32.totalorder %s850_s5, %s958_s1  ;;  %p609_p0 = scmp.lt.u32.totalorder %s607_s9, %s602_s29 }
  0x32   : > { %p605_p11 = pnand %p603_p10, %p574_p13  ;;  %p611_p3 = scmp.lt.u32.totalorder %s602_s29, %s850_s5 }
  0x33   : > { %p610_p2 = por %p609_p0, %p608_p12 }
  0x34   : > { %p606_p8 = pneg %p605_p11 }
  0x35   : > { %p612_p4 = por %p611_p3, %p610_p2 }
  0x37   : > { %p613_p1 = pnand %p612_p4, %p606_p8 }
  0x39   : > { %616 = shalt.err (!%p613_p1)
}
  0x3a   : > { %s617_s22 = scalar_lea.vmem %s162_s7, 32  ;;  %s719_s19 = smov [#allocation6]  }
  0x3b   : > { %p618_p5 = scmp.ne.s32.totalorder %s162_s7, %s617_s22  ;;  %s622_s23 = sshll.u32 %s719_s19, 4  ;;  %s623_s23 = int_to_ptr.vmem [resolvable:$false] %s622_s23 }
  0x3c   : > { %s624_s25 = scalar_lea.vmem %s623_s23, 64  ;;  %p625_p7 = scmp.lt.s32.totalorder %s162_s7, %s623_s23 }
  0x3d   : > { %p620_p10 = pnand %p618_p5, %p574_p13  ;;  %p626_p6 = scmp.lt.s32.totalorder %s624_s25, %s617_s22 }
  0x3f   : > { %p621_p11 = pneg %p620_p10  ;;  %p627_p0 = por %p626_p6, %p625_p7 }
  0x41   : > { %p628_p12 = pnand %p627_p0, %p621_p11 }
  0x43   : > { %631 = shalt.err (!%p628_p12)
}
  0x44   : > { %508 = dma.hbm_to_vmem [thread:$0]  (!%p803_p9), %s850_s5, 32, %s162_s7, %s148_s27  }
  0x45   : > { %p967_p8 = scmp.ne.s32.totalorder %s966_s24, 0 }
  0x46   : > { %s172_s26 = sand.u32 (!%p967_p8), 1, %s700_s10   ;;  %p968_p13 = scmp.ne.s32.totalorder (!%p967_p8), %s962_s20, 0 }
  0x47   : > { %170 = sbr.rel (%p967_p8) target bundleno = 433 (0x1b1), region = 28  ;;  %s481_s28 = sshll.u32 (!%p967_p8), %s172_s26, 3 }
  0x48   : > { %s173_s4 = scalar_lea.sflag (!%p967_p8), [#allocation4], %s172_s26  ;;  %s176_s6 = scalar_lea.vmem (!%p967_p8), [#allocation3], %s481_s28 }
  0x4e   : > { %683 = dma.done.wait (%p968_p13), %s173_s4, 128  }
  0x4f   : > { %685 = vsyncadd (%p968_p13), %s173_s4, 4294967168  ;;  %s482_s29 = sshll.u32 %s172_s26, 1  ;;  %s182_s3 = scalar_lea.sflag [#allocation7], %s172_s26 }
  0x50   : > { %s879_s30 = scalar_lea.vmem [#allocation6], %s482_s29 }
  0x51   : > { %687 = dma.done.wait (%p968_p13), %s182_s3, 32  }
  0x52   : > { %689 = vsyncadd (%p968_p13), %s182_s3, 4294967264  ;;  %p483_p7 = scmp.ne.s32.totalorder %s708_s12, 0 }
  0x53   : > { %v213_v0 = vlaneseq (!%p483_p7)  ;;  %v720_v1 = vmov (!%p483_p7), 0.0  }
  0x54   : > { %212 = sbr.rel (%p483_p7) target bundleno = 91 (0x5b), region = 40 }
  0x55   : > { %vm215_vm0 = vcmp.lt.s32.totalorder (!%p483_p7), %v213_v0, 256 }
  0x56   : > { %217 = vst.msk [vmem:[#allocation2] sm:$0x3] (!%p483_p7), %vm215_vm0, %v720_v1 }
  0x5b PF: > { %v218_v2 = vld [vmem:[%s176_s6] sm:$0xff]  ;;  %vm223_vm1 = vcmask 1043456   ;;  %v268_v17 = vlaneseq  ;;  %v219_v24 = vld [vmem:[%s879_s30] sm:$0x3]  ;;  %v721_v58 = vmov 1966171168  }
  0x5c   : > { %v221_v3 = vcombine.high %v218_v2, %v218_v2  ;;  %v224_v4 = vsel %vm223_vm1, %v218_v2, -inf  ;;  %v314_v59 = vunpack.c.l.s4 %v721_v58  ;;  %p484_p9 = scmp.ne.s32.totalorder %s708_s12, 1 }
  0x5d   : > { %v225_v5 = vrot.slane %v224_v4, 4  ;;  %v889_v20 = vshrl.u32 %v268_v17, 7  ;;  %vm331_vm4 = vcmp.lt.s32.totalorder %v268_v17, 256  ;;  %vm350_vm5 = vcmask (!%p484_p9), 1040384  }
  0x5e   : > { %v231_v6 = vsel %vm223_vm1, %v221_v3, -inf  ;;  %vm374_vm6 = vcmask (!%p484_p9), 0  }
  0x5f   : > { %v226_v7 = vmax.f32 %v224_v4, %v225_v5  ;;  %v232_v8 = vrot.slane %v231_v6, 4  ;;  %v272_v23 = vsub.s32 0, %v889_v20  ;;  %v276_v25 = vsub.s32 1, %v889_v20 }
  0x61   : > { %v227_v9 = vrot.slane %v226_v7, 2  ;;  %v233_v10 = vmax.f32 %v231_v6, %v232_v8  ;;  %v273_v26 = vrot.slane %v219_v24, %v272_v23  ;;  %v277_v27 = vrot.slane %v219_v24, %v276_v25 }
  0x63   : > { %v228_v11 = vmax.f32 %v226_v7, %v227_v9  ;;  %v234_v12 = vrot.slane %v233_v10, 2  ;;  %vm278_vm2 = vcmp.eq.s32.totalorder %v889_v20, %v273_v26  ;;  %vm279_vm3 = vcmp.eq.s32.totalorder %v889_v20, %v277_v27 }
  0x64   : > { %v280_v28 = vsel %vm278_vm2, %v218_v2, 0.0  ;;  %v281_v32 = vsel %vm279_vm3, %v221_v3, 0.0  ;;  %v315_v3 = vunpack.c.0.s8 %v314_v59 }
  0x65   : > { %v229_v13 = vrot.slane %v228_v11, 1  ;;  %v235_v14 = vmax.f32 %v233_v10, %v234_v12  ;;  %v282_v34 = vsel %vm223_vm1, %v280_v28, 0.0  ;;  %v289_v38 = vsel %vm223_vm1, %v281_v32, 0.0  ;;  %v307_v10 = vld [vmem:[#allocation2] sm:$0x3] }
  0x66   : > { %v283_v39 = vrot.slane %v282_v34, 4  ;;  %v290_v42 = vrot.slane %v289_v38, 4  ;;  %v318_v7 = vsub.s32 %v315_v3, %v889_v20 }
  0x67   : > { %v230_v15 = vmax.f32 %v228_v11, %v229_v13  ;;  %v236_v16 = vrot.slane %v235_v14, 1 }
  0x68   : > { %v284_v45 = vadd.f32 %v283_v39, %v282_v34  ;;  %v291_v48 = vadd.f32 %v290_v42, %v289_v38 }
  0x69   : > { %v237_v18 = vmax.f32 %v235_v14, %v236_v16 }
  0x6a   : > { %v285_v51 = vrot.slane %v284_v45, 2  ;;  %v292_v53 = vrot.slane %v291_v48, 2 }
  0x6b   : > { %v240_v19 = vcombine.low %v230_v15, %v237_v18 }
  0x6c   : > { %v286_v54 = vadd.f32 %v285_v51, %v284_v45  ;;  %v293_v55 = vadd.f32 %v292_v53, %v291_v48 }
  0x6d   : > { %v242_v21 = vsub.f32 %v218_v2, %v240_v19 }
  0x6e   : > { %v287_v56 = vrot.slane %v286_v54, 1  ;;  %v294_v57 = vrot.slane %v293_v55, 1 }
  0x6f   : > { %v243_v22 = vmul.f32 1.442695, %v242_v21 }
  0x70   : > { %v288_v62 = vadd.f32 %v287_v56, %v286_v54  ;;  %v295_v2 = vadd.f32 %v294_v57, %v293_v55 }
  0x71   : > { %564 = vpow2.f32 %v243_v22 }
  0x7b   : > { %v565_v29 = vpop.eup %564 }
  0x7c   : > { %v246_v30 = vcombine.high %v565_v29, %v565_v29  ;;  %v248_v31 = vsel %vm223_vm1, %v565_v29, 0.0 }
  0x7d   : > { %v249_v33 = vrot.slane %v248_v31, 4 }
  0x7e   : > { %v255_v35 = vsel %vm223_vm1, %v246_v30, 0.0 }
  0x7f   : > { %v250_v36 = vadd.f32 %v249_v33, %v248_v31  ;;  %v256_v37 = vrot.slane %v255_v35, 4 }
  0x81   : > { %v251_v40 = vrot.slane %v250_v36, 2  ;;  %v257_v41 = vadd.f32 %v256_v37, %v255_v35 }
  0x83   : > { %v252_v43 = vadd.f32 %v251_v40, %v250_v36  ;;  %v258_v44 = vrot.slane %v257_v41, 2 }
  0x85   : > { %v253_v46 = vrot.slane %v252_v43, 1  ;;  %v259_v47 = vadd.f32 %v258_v44, %v257_v41 }
  0x87   : > { %v254_v49 = vadd.f32 %v253_v46, %v252_v43  ;;  %v260_v50 = vrot.slane %v259_v47, 1 }
  0x89   : > { %v261_v52 = vadd.f32 %v260_v50, %v259_v47  ;;  %566 = vlog2.f32 %v254_v49 }
  0x8b   : > { %568 = vlog2.f32 %v261_v52 }
  0x93   : > { %v567_v60 = vpop.eup %566 }
  0x94   : > { %v263_v61 = vmul.f32 0.6931472, %v567_v60 }
  0x95   : > { %v569_v63 = vpop.eup %568 }
  0x96   : > { %v265_v0 = vmul.f32 0.6931472, %v569_v63  ;;  %v266_v1 = vadd.f32 %v263_v61, %v230_v15 }
  0x98   : > { %v267_v4 = vadd.f32 %v265_v0, %v237_v18  ;;  %v296_v5 = vsub.f32 %v266_v1, %v288_v62 }
  0x9a   : > { %v297_v6 = vsub.f32 %v267_v4, %v295_v2 }
  0x9c   : > { %v312_v8 = vcombine.low %v296_v5, %v297_v6 }
  0x9e   : > { %v319_v9 = vrot.slane %v312_v8, %v318_v7  ;;  %337 = sbr.rel (%p484_p9) target bundleno = 408 (0x198), region = 44 }
  0xa0   : > { %v326_v11 = vrot.slane %v319_v9, %v318_v7 }
  0xa2   : > { %v328_v12 = vadd.f32 %v326_v11, %v307_v10 }
  0xa4   : > { %333 = vst.msk [vmem:[#allocation2] sm:$0x3] %vm331_vm4, %v328_v12 }
  0xab   : > { %v338_v13 = vld [vmem:[#allocation2] sm:$0x3] }
  0xac   : > { %v343_v14 = vrot.slane %v338_v13, %v272_v23  ;;  %v347_v15 = vrot.slane %v338_v13, %v276_v25 }
  0xae   : > { %v351_v16 = vsel %vm350_vm5, %v343_v14, 0.0  ;;  %v352_v18 = vsel %vm350_vm5, %v347_v15, 0.0 }
  0xaf   : > { %v353_v19 = vadd.f32 %v352_v18, %v351_v16 }
  0xb1   : > { %354 = vadd.xlane.f32.xlu0 %v353_v19 }
 0x13e   : > { %v355_v21 = vpop.xlane.xlu0 %354 }
 0x13f   : > { %v356_v22 = vrot.slane %v355_v21, 4 }
 0x141   : > { %v357_v17 = vadd.f32 %v356_v22, %v355_v21 }
 0x143   : > { %v358_v24 = vrot.slane %v357_v17, 2 }
 0x145   : > { %v359_v26 = vadd.f32 %v358_v24, %v357_v17 }
 0x147   : > { %v360_v27 = vrot.slane %v359_v26, 1 }
 0x149   : > { %v361_v28 = vadd.f32 %v360_v27, %v359_v26 }
 0x14b   : > { %491 = vpush %v361_v28 }
 0x17c   : > { %s492_s12 = spop %491 }
 0x17d   : > { %v363_v29 = vstv %s492_s12 }
 0x17e   : > { %v365_v30 = vmul.f32 0.001953125, %v363_v29 }
 0x180   : > { %v366_v31 = vsub.f32 0.0, %v365_v30 }
 0x182   : > { %v367_v23 = vmul.f32 1.442695, %v366_v31  ;;  %v372_v34 = vmul.f32 0.5, %v366_v31 }
 0x184   : > { %570 = vpow2.f32 %v367_v23 }
 0x18e   : > { %v571_v20 = vpop.eup %570 }
 0x18f   : > { %v369_v25 = vsub.f32 1.0, %v571_v20 }
 0x191   : > { %v493_v32 = vmul.f32 %v369_v25, %v369_v25 }
 0x193   : > { %v371_v33 = vsub.f32 0.0, %v493_v32 }
 0x195   : > { %v373_v35 = vmul.f32 %v372_v34, %v371_v33 }
 0x197   : > { %375 = vst.msk [vmem:[#allocation8] sm:$0x1] %vm374_vm6, %v373_v35 }
 0x198 PF: > { %p913_p6 = scmp.eq.s32.totalorder %s471_s15, 1  ;;  %s722_s24 = smov [#allocation8]  }
 0x199   : > { %s383_s5 = sshll.u32 %s722_s24, 4  ;;  %s384_s5 = int_to_ptr.vmem [resolvable:$true] %s383_s5 }
 0x19a   : > { %s632_s7 = scalar_lea.vmem %s384_s5, 16  ;;  %s638_s27 = scalar_lea.vmem %s384_s5, 32 }
 0x19b   : > { %p633_p2 = scmp.ne.s32.totalorder %s384_s5, %s632_s7  ;;  %p639_p1 = scmp.lt.s32.totalorder %s384_s5, %s384_s5 }
 0x19c   : > { %p640_p5 = scmp.lt.s32.totalorder %s638_s27, %s632_s7 }
 0x19d   : > { %p634_p3 = pnand %p633_p2, %p913_p6 }
 0x19e   : > { %p641_p10 = por %p640_p5, %p639_p1 }
 0x19f   : > { %p635_p4 = pneg %p634_p3 }
 0x1a1   : > { %p642_p11 = pnand %p641_p10, %p635_p4 }
 0x1a3   : > { %645 = shalt.err (!%p642_p11)
}
 0x1a4   : > { %s646_s9 = scalar_lea.hbm %s959_s2, 16 }
 0x1a5   : > { %p647_p0 = scmp.ne.s32.totalorder %s959_s2, %s646_s9  ;;  %p652_p13 = scmp.lt.u32.totalorder %s646_s9, %s959_s2 }
 0x1a7   : > { %p648_p12 = pnand %p647_p0, %p913_p6 }
 0x1a9   : > { %p649_p8 = pneg %p648_p12 }
 0x1ab   : > { %p654_p7 = pnand %p652_p13, %p649_p8 }
 0x1ad   : > { %657 = shalt.err (!%p654_p7)
}
 0x1ae   : > { %499 = dma.vmem_to_hbm [thread:$0]  (%p913_p6), %s384_s5, 16, %s959_s2, [#allocation5]  }
 0x1af   : > { %691 = dma.done.wait (%p913_p6), [#allocation5], 16  }
 0x1b0   : > { %693 = vsyncadd (%p913_p6), [#allocation5], 4294967280 }
 0x1b1 PF: > { %s19_s14 = sadd.s32 1, %s716_s14   ;;  %s970_s9 = smov %s700_s10 }
 0x1b2   : > { %p16_p9 = scmp.ge.s32.totalorder %s19_s14, 4   ;;  %s971_s10 = smov %s704_s11 }
 0x1b3   : > { %s972_s11 = smov %s789_s21  ;;  %s973_s12 = smov %s712_s13 }
 0x1b4   : > { %s974_s13 = smov %s976_s16  ;;  %18 = sbr.rel (!%p16_p9) target bundleno = 7 (0x7), region = 86 }
 0x1bb   :  { %396 = vsyncpa [#allocation4], 1 }
 0x1bc   :  { %398 = vsyncpa [#allocation4 + $0x1], 1 }
 0x1bd   :  { %399 = vsyncpa [#allocation7], 1 }
 0x1be   :  { %401 = vsyncpa [#allocation7 + $0x1], 1 }
 0x1bf   :  { %402 = vsyncpa [#allocation5], 1 }
 0x1c0   :  { %404 = vsyncpa [#allocation5 + $0x1], 1 }

</bundles_post_ra>
